<compile_context>
chip_gen: v7x
topology: tpu7x:2x2x1
jax: 0.10.0
libtpu: 0.0.40
codegen_flags: <defaults>
</compile_context>

<pallas_src>
import jax
import jax.numpy as jnp
from jax.experimental import pallas as pl
from jax.experimental.pallas import tpu as pltpu


def _embed_onehot_kernel(ids_ref, table_ref, out_ref, acc_ref):
    """One vocab-block worth of the one-hot-matmul gather.

    ids_ref   : VMEM (TB, 1) int32   -- token ids for this token block
    table_ref : VMEM (VB, E)         -- one vocab block of the embedding table
    out_ref   : VMEM (TB, E)         -- gathered embeddings (written on last v)
    acc_ref   : VMEM (TB, E) f32     -- accumulator across vocab blocks
    """
    v = pl.program_id(1)

    @pl.when(v == 0)
    def _():
        acc_ref[...] = jnp.zeros_like(acc_ref)

    ids = ids_ref[...]                                   # (TB, 1) int32
    tb = ids.shape[0]
    vb = table_ref.shape[0]
    # Column ids for this vocab block: (TB, VB) iota offset by v * VB.
    col = jax.lax.broadcasted_iota(jnp.int32, (tb, vb), 1) + v * vb
    one_hot = (ids == col).astype(table_ref.dtype)       # (TB, VB)

    # Single MXU matmul -> full 8x128-dense accumulate, no masked stores.
    acc_ref[...] += jnp.dot(
        one_hot, table_ref[...], preferred_element_type=jnp.float32
    )

    @pl.when(v == pl.num_programs(1) - 1)
    def _():
        out_ref[...] = acc_ref[...].astype(out_ref.dtype)


def _round_up(x: int, m: int) -> int:
    return pl.cdiv(x, m) * m


@jax.jit
def embed_pallas(table: jax.Array, token_ids: jax.Array) -> jax.Array:
    """Pallas embedding lookup: (B, S) int ids -> (B*S, E) rows of `table`."""
    V, E = table.shape
    flat_ids = token_ids.reshape(-1).astype(jnp.int32)
    T = flat_ids.shape[0]

    # ---- choose tiling (all shape math is static under jit) ----------------
    if T <= 128:
        Tp = _round_up(T, 8)       # sublane-align the token axis
        TB = Tp
    else:
        Tp = _round_up(T, 128)
        TB = 128

    if V <= 512:
        Vp = _round_up(V, 8)
        VB = Vp
    else:
        Vp = _round_up(V, 512)
        VB = 512

    # ---- pad inputs to the tiled shapes (pad ids with 0: sliced away) ------
    ids_p = flat_ids
    if Tp != T:
        ids_p = jnp.pad(flat_ids, (0, Tp - T))
    ids_p = ids_p.reshape(Tp, 1)

    table_p = table
    if Vp != V:
        table_p = jnp.pad(table, ((0, Vp - V), (0, 0)))

    grid = (Tp // TB, Vp // VB)

    grid_spec = pltpu.PrefetchScalarGridSpec(
        num_scalar_prefetch=0,
        grid=grid,
        in_specs=[
            pl.BlockSpec((TB, 1), lambda t, v: (t, 0)),    # token ids
            pl.BlockSpec((VB, E), lambda t, v: (v, 0)),    # one vocab block
        ],
        out_specs=pl.BlockSpec((TB, E), lambda t, v: (t, 0)),
        scratch_shapes=[pltpu.VMEM((TB, E), jnp.float32)],
    )

    out = pl.pallas_call(
        _embed_onehot_kernel,
        out_shape=jax.ShapeDtypeStruct((Tp, E), table.dtype),
        grid_spec=grid_spec,
        compiler_params=pltpu.CompilerParams(
            # token blocks independent (megacore on v7x); vocab axis is a
            # reduction into the VMEM accumulator.
            dimension_semantics=("parallel", "arbitrary"),
        ),
    )(ids_p, table_p)

    return out[:T]


def ner_transformer_forward(table: jax.Array, x: jax.Array) -> float:
    """Faithful port of NERTransformer.forward: returns 0.0.

    TODO(synk): the PyTorch forward ignores its input and all parameters and
    returns a bare Python float 0.0; we reproduce that exactly and run no
    device work here (the embedding kernel is exercised separately).
    """
    del table, x
    return 0.0


if __name__ == "__main__":
    # Deterministic parameter init (nn.Embedding(vocab_size, embed_size)).
    vocab_size = 32
    embed_size = 128
    batch, seq = 2, 8

    key = jax.random.PRNGKey(0)
    k_table, k_ids = jax.random.split(key)
    # nn.Embedding default init ~ N(0, 1)
    table = jax.random.normal(k_table, (vocab_size, embed_size), dtype=jnp.float32)
    token_ids = jax.random.randint(k_ids, (batch, seq), 0, vocab_size, dtype=jnp.int32)

    # Run the Pallas embedding kernel once and check it against plain JAX.
    emb = embed_pallas(table, token_ids)
    jax.block_until_ready(emb)
    ref = table[token_ids.reshape(-1)]
    assert emb.shape == (batch * seq, embed_size)
    assert jnp.allclose(emb, ref), "embedding gather mismatch"

    # Full forward pass (matches PyTorch: returns 0.0, no device work).
    result = ner_transformer_forward(table, token_ids)
    assert result == 0.0

    print("KERNEL_OK")
</pallas_src>

<mosaic_0001>
module attributes {stable_mosaic.version = 11 : i64} {
  func.func @_embed_onehot_kernel(%arg0: i32, %arg1: i32, %arg2: memref<16x1xi32, #tpu.memory_space<vmem>>, %arg3: memref<32x128xf32, #tpu.memory_space<vmem>>, %arg4: memref<16x128xf32, #tpu.memory_space<vmem>>, %arg5: memref<16x128xf32, #tpu.memory_space<vmem>>) attributes {dimension_semantics = [#tpu.dimension_semantics<parallel>, #tpu.dimension_semantics<arbitrary>], iteration_bounds = array<i64: 1, 1>, scalar_prefetch = 0 : i64, scratch_operands = 1 : i64, tpu.core_type = #tpu.core_type<tc>, window_params = [{transform_indices = @transform_0, window_bounds = array<i64: 16, 1>}, {transform_indices = @transform_1, window_bounds = array<i64: 32, 128>}, {transform_indices = @transform_2, window_bounds = array<i64: 16, 128>}]} {
    %c0_i32 = arith.constant 0 : i32
    %0 = arith.cmpi eq, %arg1, %c0_i32 : i32
    %1 = arith.extui %0 : i1 to i32
    %c0_i32_0 = arith.constant 0 : i32
    %2 = arith.cmpi ne, %1, %c0_i32_0 : i32
    scf.if %2 {
      %cst_10 = arith.constant 0.000000e+00 : f32
      %20 = vector.broadcast %cst_10 : f32 to vector<16x128xf32>
      %c0_11 = arith.constant 0 : index
      %c0_12 = arith.constant 0 : index
      %21 = vector.load %arg5[%c0_11, %c0_12] : memref<16x128xf32, #tpu.memory_space<vmem>>, vector<16x128xf32>
      tpu.vector_store %arg5[%c0_11, %c0_12], %20 {strides = array<i32>} : memref<16x128xf32, #tpu.memory_space<vmem>>, vector<16x128xf32>,
    } else {
    }
    %c0 = arith.constant 0 : index
    %c0_1 = arith.constant 0 : index
    %3 = vector.load %arg2[%c0, %c0_1] : memref<16x1xi32, #tpu.memory_space<vmem>>, vector<16x1xi32>
    %4 = tpu.iota {dimensions = array<i32: 1>} : vector<16x32xi32>
    %c32_i32 = arith.constant 32 : i32
    %5 = arith.muli %arg1, %c32_i32 : i32
    %6 = vector.broadcast %5 : i32 to vector<16x32xi32>
    %7 = arith.addi %4, %6 : vector<16x32xi32>
    %8 = vector.broadcast %3 : vector<16x1xi32> to vector<16x32xi32>
    %9 = arith.cmpi eq, %8, %7 : vector<16x32xi32>
    %10 = arith.extui %9 : vector<16x32xi1> to vector<16x32xi32>
    %11 = arith.sitofp %10 : vector<16x32xi32> to vector<16x32xf32>
    %c0_2 = arith.constant 0 : index
    %c0_3 = arith.constant 0 : index
    %12 = vector.load %arg5[%c0_2, %c0_3] : memref<16x128xf32, #tpu.memory_space<vmem>>, vector<16x128xf32>
    %c0_4 = arith.constant 0 : index
    %c0_5 = arith.constant 0 : index
    %13 = vector.load %arg3[%c0_4, %c0_5] : memref<32x128xf32, #tpu.memory_space<vmem>>, vector<32x128xf32>
    %cst = arith.constant dense<0.000000e+00> : vector<16x128xf32>
    %14 = tpu.matmul %11, %13, %cst {dimension_numbers = #tpu.dot_dimension_numbers<[1], [0], [0], [1], [0, 0, 1, 1], [], []>} : vector<16x32xf32>, vector<32x128xf32>, vector<16x128xf32> -> vector<16x128xf32>
    %15 = arith.addf %12, %14 : vector<16x128xf32>
    %c0_6 = arith.constant 0 : index
    %c0_7 = arith.constant 0 : index
    %16 = vector.load %arg5[%c0_6, %c0_7] : memref<16x128xf32, #tpu.memory_space<vmem>>, vector<16x128xf32>
    tpu.vector_store %arg5[%c0_6, %c0_7], %15 {strides = array<i32>} : memref<16x128xf32, #tpu.memory_space<vmem>>, vector<16x128xf32>,
    %c0_i32_8 = arith.constant 0 : i32
    %17 = arith.cmpi eq, %arg1, %c0_i32_8 : i32
    %18 = arith.extui %17 : i1 to i32
    %c0_i32_9 = arith.constant 0 : i32
    %19 = arith.cmpi ne, %18, %c0_i32_9 : i32
    scf.if %19 {
      %c0_10 = arith.constant 0 : index
      %c0_11 = arith.constant 0 : index
      %20 = vector.load %arg5[%c0_10, %c0_11] : memref<16x128xf32, #tpu.memory_space<vmem>>, vector<16x128xf32>
      %c0_12 = arith.constant 0 : index
      %c0_13 = arith.constant 0 : index
      %21 = vector.load %arg4[%c0_12, %c0_13] : memref<16x128xf32, #tpu.memory_space<vmem>>, vector<16x128xf32>
      tpu.vector_store %arg4[%c0_12, %c0_13], %20 {strides = array<i32>} : memref<16x128xf32, #tpu.memory_space<vmem>>, vector<16x128xf32>,
    } else {
    }
    return
  }
  func.func @transform_0(%arg0: i32, %arg1: i32) -> (i32, i32) {
    %c0_i32 = arith.constant 0 : i32
    %c0_i32_0 = arith.constant 0 : i32
    return %arg0, %c0_i32 : i32, i32
  }
  func.func @transform_1(%arg0: i32, %arg1: i32) -> (i32, i32) {
    %c0_i32 = arith.constant 0 : i32
    %c0_i32_0 = arith.constant 0 : i32
    return %arg1, %c0_i32 : i32, i32
  }
  func.func @transform_2(%arg0: i32, %arg1: i32) -> (i32, i32) {
    %c0_i32 = arith.constant 0 : i32
    %c0_i32_0 = arith.constant 0 : i32
    return %arg0, %c0_i32 : i32, i32
  }
}

</mosaic_0001>

<bundles_post_ra>
// kernel: embed_pallas.1
= control target key start
LH: loop header
LB: loop body
LE: loop exit
PB: predicated region body
PF: predicated region fallthrough
CT: control target
= control target key end

     0   :  { %7 = vsyncpa [#allocation4], 0  ;;  %s308_s0 = inlined_call_operand.vmem [shape: s32[16,1], index: 0, kind: input, shape index: {}]   ;;  %s309_s1 = inlined_call_operand.hbm [shape: f32[32,128], index: 1, kind: input, shape index: {}]   ;;  %s310_s2 = inlined_call_operand.hbm [shape: f32[16,128], index: 2, kind: output, shape index: {}]  }
   0x1   :  { %8 = vsyncpa [#allocation5], 0  ;;  %s251_s9 = smov [#allocation3]   ;;  %s203_s13 = scalar_lea.hbm %s309_s1, 512 }
   0x2   :  { %s16_s10 = sshll.u32 %s251_s9, 4  ;;  %p204_p0 = scmp.ne.s32.totalorder %s309_s1, %s203_s13  ;;  %s17_s10 = int_to_ptr.vmem [resolvable:$true] %s16_s10 }
   0x3   :  { %p207_p1 = scmp.lt.u32.totalorder %s203_s13, %s309_s1 }
   0x5   :  { %p209_p2 = pnand %p207_p1, %p204_p0 }
   0x7   :  { %212 = shalt.err (!%p209_p2)
}
   0x8   :  { %s213_s18 = scalar_lea.vmem %s17_s10, 512  ;;  %p218_p4 = scmp.lt.s32.totalorder %s17_s10, %s17_s10 }
   0x9   :  { %p214_p3 = scmp.ne.s32.totalorder %s17_s10, %s213_s18  ;;  %p219_p5 = scmp.lt.s32.totalorder %s213_s18, %s213_s18 }
   0xb   :  { %p220_p6 = por %p219_p5, %p218_p4 }
   0xd   :  { %p221_p7 = pnand %p220_p6, %p214_p3 }
   0xf   :  { %224 = shalt.err (!%p221_p7)
}
  0x10   :  { %s252_s19 = smov 128   ;;  %s253_s20 = smov 8  }
  0x11   :  { %22 = dma.hbm_to_vmem [thread:$0]  %s309_s1, 512, %s17_s10, [#allocation4], %s252_s19, %s252_s19, %s253_s20  }
  0x12   :  { %247 = dma.done.wait [#allocation4], 512  }
  0x13   :  { %248 = vsyncadd [#allocation4], 4294966784  ;;  %v254_v0 = vmov 0   ;;  %v32_v1 = vld [vmem:[%s308_s0] sm:$0xff]  ;;  %v54_v3 = vld [vmem:[#allocation3 + $0x8] sm:$0xff]  ;;  %v34_v9 = vlaneseq  ;;  %vm57_vm0 = vcmask 261120  }
  0x14   :  { %202 = vset.pattern.permute.xlu0 %v254_v0  ;;  %v53_v2 = vld [vmem:[#allocation3] sm:$0xff]  ;;  %v55_v4 = vld [vmem:[#allocation3 + $0x10] sm:$0xff]  ;;  %v56_v5 = vld [vmem:[#allocation3 + $0x18] sm:$0xff]  ;;  %v255_v12 = vmov 0.0  }
  0x15   :  { %40 = vperm.xlu0 %202, %v32_v1   ;;  %v33_v6 = vld [vmem:[%s308_s0 + $0x8] sm:$0xff]  ;;  %v188_v7 = vpack.c.bf16 %v54_v3, %v53_v2  ;;  %v192_v8 = vpack.c.bf16 %v56_v5, %v55_v4  ;;  %v35_v10 = vand.u32 127, %v34_v9  ;;  %s256_s0 = smov [#allocation6]  }
  0x16   :  { %s155_s1 = sshll.u32 %s256_s0, 4  ;;  %s156_s1 = int_to_ptr.vmem [resolvable:$true] %s155_s1 }
  0x17   :  { %189 = vmatprep.subr.bf16.mxu0 %v188_v7  ;;  %s225_s27 = scalar_lea.vmem %s156_s1, 256  ;;  %p230_p9 = scmp.lt.s32.totalorder %s156_s1, %s156_s1 }
  0x18   :  { %191 = vmatpush3.bf16.msra.mxu0 %v188_v7  ;;  %p226_p8 = scmp.ne.s32.totalorder %s156_s1, %s225_s27  ;;  %p231_p10 = scmp.lt.s32.totalorder %s225_s27, %s225_s27 }
  0x19   :  { %43 = vperm.xlu0 %202, %v33_v6   ;;  %193 = vmatprep.subr.bf16.mxu0 %v192_v8 }
  0x1a   :  { %p232_p11 = por %p231_p10, %p230_p9 }
  0x1c   :  { %195 = vmatpush3.bf16.msra.mxu0 %v192_v8  ;;  %p233_p12 = pnand %p232_p11, %p226_p8 }
  0x94   :  { %v41_v11 = vpop.permute.xlu0 %40 }
  0x95   :  { %vm45_vm1 = vcmp.eq.s32.totalorder %v41_v11, %v35_v10 }
  0x96   :  { %v167_v13 = vsel %vm45_vm1, 1.0, %v255_v12 }
  0x97   :  { %185 = vmatprep.mubr.msk.f32.mxu0 %vm57_vm0, %v167_v13 }
  0x98   :  { %v44_v14 = vpop.permute.xlu0 %43 }
  0x99   :  { %vm46_vm2 = vcmp.eq.s32.totalorder %v44_v14, %v35_v10 }
  0x9a   :  { %v168_v15 = vsel %vm46_vm2, 1.0, %v255_v12 }
  0x9b   :  { %186 = vmatmul.mubr.msk.f32.vlgmr.msra.gmra.mrb[0].mxu0 %vm57_vm0, %v168_v15 }
 0x16e   :  { %v187_v16 = vpop.f32.mrb[0].mxu0 }
 0x16f   :  { %149 = vst [vmem:[#allocation6 + $0x8] sm:$0xff] %v187_v16  ;;  %v130_v17 = vpop.f32.mrb[1].mxu0 }
 0x170   :  { %148 = vst [vmem:[#allocation6] sm:$0xff] %v130_v17 }
 0x171   :  { %236 = shalt.err (!%p233_p12)
}
 0x172   :  { %s237_s30 = scalar_lea.hbm %s310_s2, 256 }
 0x173   :  { %p238_p13 = scmp.ne.s32.totalorder %s310_s2, %s237_s30  ;;  %p241_p0 = scmp.lt.u32.totalorder %s237_s30, %s310_s2 }
 0x175   :  { %p243_p1 = pnand %p241_p0, %p238_p13 }
 0x177   :  { %246 = shalt.err (!%p243_p1)
}
 0x178   :  { %161 = dma.vmem_to_hbm [thread:$0]  %s156_s1, 256, %s310_s2, [#allocation5], %s252_s19, %s252_s19, %s253_s20  }
 0x179   :  { %249 = dma.done.wait [#allocation5], 256  }
 0x17a   :  { %250 = vsyncadd [#allocation5], 4294967040 }
 0x17b   :  { %165 = vsyncpa [#allocation4], 1 }
 0x17c   :  { %166 = vsyncpa [#allocation5], 1 }

</bundles_post_ra>
